<compile_context>
chip_gen: v7x
topology: tpu7x:2x2x1
jax: 0.10.0
libtpu: 0.0.40
codegen_flags: <defaults>
</compile_context>

<pallas_src>
import functools

import jax
import jax.numpy as jnp
from jax.experimental import pallas as pl
from jax.experimental.pallas import tpu as pltpu


def _round_up(x, m):
    return (x + m - 1) // m * m


def _cdiv(a, b):
    return (a + b - 1) // b


def _default_vmem_budget():
    """Half of physical VMEM, capped at 64 MiB (v5e/v6e -> 64 MiB, v7x -> 32 MiB)."""
    try:
        phys = int(pltpu.get_tpu_info().vmem_capacity_bytes)
    except Exception:
        phys = 0
    if phys < (32 << 20):            # unknown / implausible -> v7x-safe default
        phys = 64 << 20
    return min(phys // 2, 64 << 20)


def _patch_embed_kernel(p_ref, w_ref, b_ref, o_ref):
    # p_ref: [TM, Kp] patch rows; w_ref: [Kp, TE] weight slab;
    # b_ref: [1, TE] f32 bias row; o_ref: [TM, TE] output tile.
    acc = jnp.dot(p_ref[...], w_ref[...], preferred_element_type=jnp.float32)
    o_ref[...] = (acc + b_ref[...]).astype(o_ref.dtype)


def patch_embedding(x, weight, bias, patch_size, *,
                    compute_dtype=jnp.bfloat16, out_dtype=None,
                    vmem_limit_bytes=None):
    """ViT patch embedding. x: [B,C,H,W]; weight: [E,C,P,P]; bias: [E].

    Returns [B, N, E] with N = (H//P)*(W//P), matching
    Conv2d(stride=P).flatten(2).transpose(1, 2).
    """
    B, C, H, W = x.shape
    E = weight.shape[0]
    P = patch_size
    assert H % P == 0 and W % P == 0, "spatial dims must be divisible by patch"
    nH, nW = H // P, W // P
    N = nH * nW
    M = B * N
    K = C * P * P
    out_dtype = x.dtype if out_dtype is None else out_dtype
    cdt = x.dtype if compute_dtype is None else compute_dtype

    # ---- layout glue (fused by XLA under jit): cast + im2col + K pad --------
    # TODO(synk): fold the (c,p,q) patch gather into the kernel (block x
    # directly over a (batch, patch-row) grid) to remove this wrapper pass.
    patches = (x.astype(cdt)
               .reshape(B, C, nH, P, nW, P)
               .transpose(0, 2, 4, 1, 3, 5)
               .reshape(M, K))
    w_flat = weight.astype(cdt).reshape(E, K).T          # [K, E], same (c,p,q) order
    b_row = bias.astype(jnp.float32).reshape(1, E)

    Kp = _round_up(K, 128)     # contraction dim must be genuinely zero-padded
    if Kp != K:
        patches = jnp.pad(patches, ((0, 0), (0, Kp - K)))
        w_flat = jnp.pad(w_flat, ((0, Kp - K), (0, 0)))

    # ---- tile selection under a per-generation VMEM budget -------------------
    budget = _default_vmem_budget() if vmem_limit_bytes is None else int(vmem_limit_bytes)
    in_b = jnp.dtype(cdt).itemsize
    out_b = jnp.dtype(out_dtype).itemsize

    def fits(tm, te):
        vmem = (2 * tm * Kp * in_b        # patches tile (double-buffered)
                + 2 * Kp * te * in_b      # weight slab
                + 2 * 8 * te * 4          # bias row (sublane-padded)
                + 2 * tm * te * out_b)    # output tile
        return vmem <= int(budget * 0.8)

    # E tile: exact for tiny E; otherwise a single 256-aligned tile covering all
    # of E (weight fetched exactly once), shrinking in 256 steps only if needed.
    if E <= 128:
        TE = E
    else:
        TE = _round_up(E, 256)
        while TE > 256 and not fits(256, TE):
            TE -= 256

    # M tile: as large as the budget allows (<= 1024), 256-aligned when M >= 256.
    tm_cap = min(1024, _round_up(M, 8))
    if tm_cap >= 256:
        TM = (tm_cap // 256) * 256
        while TM > 256 and not fits(TM, TE):
            TM -= 256
    else:
        TM = tm_cap
    # NOTE: if even (TM=256, TE=256) overflowed (huge K, e.g. P=32 and many
    # channels), the right fix is a K grid axis ("arbitrary") + f32 accumulator.

    Mg, Eg = _cdiv(M, TM), _cdiv(E, TE)
    w_fetches = 1 if Eg == 1 else Mg * Eg   # weight slab re-DMA'd only when Eg > 1
    cost = pl.CostEstimate(
        flops=2 * (Mg * TM) * Kp * (Eg * TE),
        transcendentals=0,
        bytes_accessed=(Mg * TM * Kp * in_b
                        + w_fetches * Kp * TE * in_b
                        + Mg * Eg * TM * TE * out_b),
    )

    out_flat = pl.pallas_call(
        _patch_embed_kernel,
        out_shape=jax.ShapeDtypeStruct((M, E), out_dtype),
        grid=(Mg, Eg),
        in_specs=[
            pl.BlockSpec((TM, Kp), lambda i, j: (i, 0)),   # patches tile
            pl.BlockSpec((Kp, TE), lambda i, j: (0, j)),   # weight slab
            pl.BlockSpec((1, TE), lambda i, j: (0, j)),    # bias row
        ],
        out_specs=pl.BlockSpec((TM, TE), lambda i, j: (i, j)),
        compiler_params=pltpu.CompilerParams(
            dimension_semantics=("parallel", "parallel"),
            vmem_limit_bytes=int(budget),
        ),
        cost_estimate=cost,
    )(patches, w_flat, b_row)

    return out_flat.reshape(B, N, E)


if __name__ == "__main__":
    # Small shapes consistent with the module's forward pass.
    B, C, H, W = 2, 4, 16, 16
    patch_size = 4
    embed_dim = 32

    key = jax.random.PRNGKey(0)
    kx, kw, kb = jax.random.split(key, 3)

    x = jax.random.normal(kx, (B, C, H, W), dtype=jnp.float32)
    # Deterministic synthetic Conv2d parameters: [E, C, P, P], [E].
    weight = 0.02 * jax.random.normal(
        kw, (embed_dim, C, patch_size, patch_size), dtype=jnp.float32)
    bias = 0.02 * jax.random.normal(kb, (embed_dim,), dtype=jnp.float32)

    fn_bf16 = jax.jit(functools.partial(patch_embedding, patch_size=patch_size))
    fn_f32 = jax.jit(functools.partial(patch_embedding, patch_size=patch_size,
                                       compute_dtype=jnp.float32))

    out = jax.block_until_ready(fn_bf16(x, weight, bias))       # default bf16 operands
    out_f32 = jax.block_until_ready(fn_f32(x, weight, bias))    # f32 operands

    # Pure-JAX reference: Conv2d(stride=P) + flatten(2).transpose(1, 2).
    ref = jax.lax.conv_general_dilated(
        x, weight,
        window_strides=(patch_size, patch_size),
        padding="VALID",
        dimension_numbers=("NCHW", "OIHW", "NCHW"),
    ) + bias.reshape(1, embed_dim, 1, 1)
    ref = ref.reshape(B, embed_dim, -1).transpose(0, 2, 1)

    N = (H // patch_size) * (W // patch_size)
    assert out.shape == (B, N, embed_dim)
    assert jnp.allclose(out_f32, ref, atol=1e-4, rtol=1e-4), "f32 path mismatch"
    assert jnp.allclose(out.astype(jnp.float32), ref, atol=2e-2, rtol=2e-2), \
        "bf16 path mismatch"
    print("KERNEL_OK")
</pallas_src>

<mosaic_0001>
module attributes {stable_mosaic.version = 11 : i64} {
  func.func @_patch_embed_kernel(%arg0: i32, %arg1: i32, %arg2: memref<32x128xbf16, #tpu.memory_space<vmem>>, %arg3: memref<128x32xbf16, #tpu.memory_space<vmem>>, %arg4: memref<1x32xf32, #tpu.memory_space<vmem>>, %arg5: memref<32x32xf32, #tpu.memory_space<vmem>>) attributes {dimension_semantics = [#tpu.dimension_semantics<parallel>, #tpu.dimension_semantics<parallel>], iteration_bounds = array<i64: 1, 1>, scalar_prefetch = 0 : i64, scratch_operands = 0 : i64, tpu.core_type = #tpu.core_type<tc>, window_params = [{transform_indices = @transform_0, window_bounds = array<i64: 32, 128>}, {transform_indices = @transform_1, window_bounds = array<i64: 128, 32>}, {transform_indices = @transform_2, window_bounds = array<i64: 1, 32>}, {transform_indices = @transform_3, window_bounds = array<i64: 32, 32>}]} {
    %c0 = arith.constant 0 : index
    %c0_0 = arith.constant 0 : index
    %0 = vector.load %arg2[%c0, %c0_0] : memref<32x128xbf16, #tpu.memory_space<vmem>>, vector<32x128xbf16>
    %c0_1 = arith.constant 0 : index
    %c0_2 = arith.constant 0 : index
    %1 = vector.load %arg3[%c0_1, %c0_2] : memref<128x32xbf16, #tpu.memory_space<vmem>>, vector<128x32xbf16>
    %cst = arith.constant dense<0.000000e+00> : vector<32x32xf32>
    %2 = tpu.matmul %0, %1, %cst {dimension_numbers = #tpu.dot_dimension_numbers<[1], [0], [0], [1], [0, 0, 1, 1], [], []>} : vector<32x128xbf16>, vector<128x32xbf16>, vector<32x32xf32> -> vector<32x32xf32>
    %c0_3 = arith.constant 0 : index
    %c0_4 = arith.constant 0 : index
    %3 = vector.load %arg4[%c0_3, %c0_4] : memref<1x32xf32, #tpu.memory_space<vmem>>, vector<1x32xf32>
    %4 = vector.broadcast %3 : vector<1x32xf32> to vector<32x32xf32>
    %5 = arith.addf %2, %4 : vector<32x32xf32>
    %c0_5 = arith.constant 0 : index
    %c0_6 = arith.constant 0 : index
    %6 = vector.load %arg5[%c0_5, %c0_6] : memref<32x32xf32, #tpu.memory_space<vmem>>, vector<32x32xf32>
    tpu.vector_store %arg5[%c0_5, %c0_6], %5 {strides = array<i32>} : memref<32x32xf32, #tpu.memory_space<vmem>>, vector<32x32xf32>,
    return
  }
  func.func @transform_0(%arg0: i32, %arg1: i32) -> (i32, i32) {
    %c0_i32 = arith.constant 0 : i32
    %c0_i32_0 = arith.constant 0 : i32
    return %arg0, %c0_i32 : i32, i32
  }
  func.func @transform_1(%arg0: i32, %arg1: i32) -> (i32, i32) {
    %c0_i32 = arith.constant 0 : i32
    %c0_i32_0 = arith.constant 0 : i32
    return %c0_i32, %arg1 : i32, i32
  }
  func.func @transform_2(%arg0: i32, %arg1: i32) -> (i32, i32) {
    %c0_i32 = arith.constant 0 : i32
    %c0_i32_0 = arith.constant 0 : i32
    return %c0_i32, %arg1 : i32, i32
  }
  func.func @transform_3(%arg0: i32, %arg1: i32) -> (i32, i32) {
    %c0_i32 = arith.constant 0 : i32
    return %arg0, %arg1 : i32, i32
  }
}

</mosaic_0001>

<bundles_post_ra>
// kernel: patch_embedding.1
= control target key start
LH: loop header
LB: loop body
LE: loop exit
PB: predicated region body
PF: predicated region fallthrough
CT: control target
= control target key end

     0   :  { %s319_s0 = inlined_call_operand.vmem [shape: bf16[32,128], index: 0, kind: input, shape index: {}]   ;;  %s320_s1 = inlined_call_operand.vmem [shape: bf16[128,32], index: 1, kind: input, shape index: {}]   ;;  %s321_s2 = inlined_call_operand.vmem [shape: f32[1,32], index: 2, kind: input, shape index: {}]   ;;  %s322_s3 = inlined_call_operand.hbm [shape: f32[32,32], index: 3, kind: output, shape index: {}]  }
   0x1   :  { %v217_v0 = vld [vmem:[%s320_s1] sm:$0xff]   ;;  %v218_v1 = vld [vmem:[%s320_s1 + $0x8] sm:$0xff]   ;;  %v219_v2 = vld [vmem:[%s320_s1 + $0x10] sm:$0xff]  }
   0x2   :  { %194 = vmatprep.subr.bf16.mxu0 %v217_v0  ;;  %v220_v3 = vld [vmem:[%s320_s1 + $0x18] sm:$0xff]   ;;  %v225_v4 = vld [vmem:[%s319_s0] sm:$0xff]  }
   0x3   :  { %195 = vmatpush3.bf16.msra.mxu0 %v217_v0  ;;  %210 = vmatprep.mubr.bf16.mxu0 %v225_v4 }
   0x4   :  { %196 = vmatprep.subr.bf16.mxu0 %v218_v1 }
   0x7   :  { %197 = vmatpush3.bf16.msra.mxu0 %v218_v1 }
   0x8   :  { %198 = vmatprep.subr.bf16.mxu0 %v219_v2 }
   0x9   :  { %8 = vsyncpa [#allocation3], 0  ;;  %v221_v5 = vld [vmem:[%s320_s1 + $0x20] sm:$0xff]   ;;  %v222_v6 = vld [vmem:[%s320_s1 + $0x28] sm:$0xff]   ;;  %vm152_vm0 = vcmask 261120   ;;  %s251_s7 = smov [#allocation2]  }
   0xa   :  { %v223_v7 = vld [vmem:[%s320_s1 + $0x30] sm:$0xff]   ;;  %v224_v8 = vld [vmem:[%s320_s1 + $0x38] sm:$0xff]   ;;  %v226_v9 = vld [vmem:[%s319_s0 + $0x8] sm:$0xff]   ;;  %s162_s8 = sshll.u32 %s251_s7, 4  ;;  %s163_s8 = int_to_ptr.vmem [resolvable:$true] %s162_s8 }
   0xb   :  { %199 = vmatpush3.bf16.msra.mxu0 %v219_v2  ;;  %v173_v10 = vld [vmem:[%s321_s2] ss:$0 sm:$0xff]  ;;  %s227_s0 = scalar_lea.vmem %s163_s8, 512  ;;  %p232_p1 = scmp.lt.s32.totalorder %s163_s8, %s163_s8 }
   0xc   :  { %200 = vmatprep.subr.bf16.mxu0 %v220_v3  ;;  %p228_p0 = scmp.ne.s32.totalorder %s163_s8, %s227_s0  ;;  %p233_p2 = scmp.lt.s32.totalorder %s227_s0, %s227_s0 }
   0xe   :  { %p234_p3 = por %p233_p2, %p232_p1 }
   0xf   :  { %201 = vmatpush3.bf16.msra.mxu0 %v220_v3 }
  0x10   :  { %202 = vmatprep.subr.bf16.mxu0 %v221_v5  ;;  %p235_p4 = pnand %p234_p3, %p228_p0 }
  0x13   :  { %203 = vmatpush3.bf16.msra.mxu0 %v221_v5 }
  0x14   :  { %204 = vmatprep.subr.bf16.mxu0 %v222_v6 }
  0x17   :  { %205 = vmatpush3.bf16.msra.mxu0 %v222_v6 }
  0x18   :  { %206 = vmatprep.subr.bf16.mxu0 %v223_v7 }
  0x1b   :  { %207 = vmatpush3.bf16.msra.mxu0 %v223_v7 }
  0x1c   :  { %208 = vmatprep.subr.bf16.mxu0 %v224_v8 }
  0x1f   :  { %209 = vmatpush3.bf16.msra.mxu0 %v224_v8 }
  0x22   :  { %211 = vmatmul.mubr.bf16.vlgmr.msra.gmra.mrb[0].mxu0 %v226_v9 }
  0xf5   :  { %v212_v11 = vpop.f32.mrb[0].mxu0 }
  0xf6   :  { %v146_v12 = vadd.f32 %v212_v11, %v173_v10  ;;  %v137_v13 = vpop.f32.mrb[1].mxu0 }
  0xf7   :  { %v138_v14 = vadd.f32 %v173_v10, %v137_v13  ;;  %v213_v15 = vpop.f32.mrb[2].mxu0 }
  0xf8   :  { %155 = vst.msk [vmem:[#allocation2 + $0x10] sm:$0xff] %vm152_vm0, %v146_v12  ;;  %v149_v16 = vadd.f32 %v213_v15, %v173_v10  ;;  %v140_v17 = vpop.f32.mrb[3].mxu0 }
  0xf9   :  { %153 = vst.msk [vmem:[#allocation2] sm:$0xff] %vm152_vm0, %v138_v14  ;;  %v141_v18 = vadd.f32 %v173_v10, %v140_v17 }
  0xfa   :  { %156 = vst.msk [vmem:[#allocation2 + $0x18] sm:$0xff] %vm152_vm0, %v149_v16 }
  0xfb   :  { %154 = vst.msk [vmem:[#allocation2 + $0x8] sm:$0xff] %vm152_vm0, %v141_v18 }
  0xfc   :  { %238 = shalt.err (!%p235_p4)
}
  0xfd   :  { %s239_s9 = scalar_lea.hbm %s322_s3, 512 }
  0xfe   :  { %p240_p5 = scmp.ne.s32.totalorder %s322_s3, %s239_s9  ;;  %p243_p6 = scmp.lt.u32.totalorder %s239_s9, %s322_s3 }
 0x100   :  { %p245_p7 = pnand %p243_p6, %p240_p5 }
 0x102   :  { %248 = shalt.err (!%p245_p7)
}
 0x103   :  { %s252_s14 = smov 128   ;;  %s253_s15 = smov 8  }
 0x104   :  { %168 = dma.vmem_to_hbm [thread:$0]  %s163_s8, 512, %s322_s3, [#allocation3], %s252_s14, %s252_s14, %s253_s15  }
 0x105   :  { %249 = dma.done.wait [#allocation3], 512  }
 0x106   :  { %250 = vsyncadd [#allocation3], 4294966784 }
 0x107   :  { %172 = vsyncpa [#allocation3], 1 }

</bundles_post_ra>
